<compile_context>
chip_gen: v7x
topology: tpu7x:2x2x1
jax: 0.10.0
libtpu: 0.0.40
codegen_flags: <defaults>
</compile_context>

<pallas_src>
import functools
import math
import numpy as np
import jax
import jax.numpy as jnp
from jax.experimental import pallas as pl
from jax.experimental.pallas import tpu as pltpu


def _round_up(x, m):
    return ((x + m - 1) // m) * m


def _cdiv(a, b):
    return -(-a // b)


# ----------------------------- host-side parameter setup (numpy, once) -----------------------------

def hann_window_np(win_length):
    # torch.hann_window(N) is periodic: 0.5 * (1 - cos(2*pi*n/N))
    n = np.arange(win_length, dtype=np.float64)
    return 0.5 * (1.0 - np.cos(2.0 * np.pi * n / win_length))


def _hz_to_mel_slaney(f):
    f = np.asarray(f, dtype=np.float64)
    f_sp = 200.0 / 3.0
    min_log_hz = 1000.0
    min_log_mel = min_log_hz / f_sp
    logstep = math.log(6.4) / 27.0
    return np.where(f >= min_log_hz,
                    min_log_mel + np.log(np.maximum(f, 1e-10) / min_log_hz) / logstep,
                    f / f_sp)


def _mel_to_hz_slaney(m):
    m = np.asarray(m, dtype=np.float64)
    f_sp = 200.0 / 3.0
    min_log_hz = 1000.0
    min_log_mel = min_log_hz / f_sp
    logstep = math.log(6.4) / 27.0
    return np.where(m >= min_log_mel,
                    min_log_hz * np.exp(logstep * (m - min_log_mel)),
                    f_sp * m)


def melscale_fbanks_np(n_freqs, f_min, f_max, n_mels, sample_rate):
    # torchaudio.functional.melscale_fbanks(..., norm='slaney', mel_scale='slaney')
    all_freqs = np.linspace(0.0, sample_rate / 2.0, n_freqs)
    m_min = _hz_to_mel_slaney(f_min)
    m_max = _hz_to_mel_slaney(f_max)
    m_pts = np.linspace(m_min, m_max, n_mels + 2)
    f_pts = _mel_to_hz_slaney(m_pts)                       # (n_mels + 2,)
    f_diff = f_pts[1:] - f_pts[:-1]                        # (n_mels + 1,)
    slopes = f_pts[None, :] - all_freqs[:, None]           # (n_freqs, n_mels + 2)
    down = -slopes[:, :-2] / f_diff[:-1]
    up = slopes[:, 2:] / f_diff[1:]
    fb = np.maximum(0.0, np.minimum(down, up))             # (n_freqs, n_mels)
    enorm = 2.0 / (f_pts[2:n_mels + 2] - f_pts[:n_mels])
    fb = fb * enorm[None, :]
    return fb.astype(np.float32)


def windowed_rdft_np(n_fft, n_cols, window):
    # X[k] = sum_n w[n]*x[n] * exp(-2*pi*i*k*n/n_fft)  (onesided, window folded in)
    n = np.arange(n_fft, dtype=np.float64)[:, None]
    k = np.arange(n_cols, dtype=np.float64)[None, :]
    ang = 2.0 * np.pi * n * k / n_fft
    cos_w = (window[:, None] * np.cos(ang)).astype(np.float32)
    sin_w = (window[:, None] * (-np.sin(ang))).astype(np.float32)
    return cos_w, sin_w                                    # (n_fft, n_cols) each


# ----------------------------- Pallas kernel (hot path) -----------------------------

def _logmel_kernel(ya_ref, yb_ref, cs_ref, fb_ref, out_ref, *, ratio, f_pad):
    # grid = (batch b, frame tile j); both parallel, no reduction axis.
    #   ya_ref : (1, TR, hop)  bf16  hop-rows [j*TR,     j*TR + TR)
    #   yb_ref : (1, TR, hop)  bf16  hop-rows [(j+1)*TR, (j+1)*TR + TR) (first ratio-1 rows used)
    #   cs_ref : (n_fft, 2*f_pad) bf16, VMEM-resident windowed [cos | sin] DFT weights
    #   fb_ref : (f_pad, n_mels)  bf16, VMEM-resident mel filterbank
    ya = ya_ref[0]                                             # (TR, hop)
    yb = yb_ref[0]                                             # (TR, hop)

    # frame (j*TR + i) = concat_r hoprow[j*TR + i + r], r = 0..ratio-1
    # column block r is hoprows [j*TR + r, j*TR + r + TR) = ya[r:] ++ yb[:r]
    if ratio == 1:
        frames = ya
    else:
        cols = [ya]
        for r in range(1, ratio):
            cols.append(jnp.concatenate([ya[r:], yb[:r]], axis=0))
        frames = jnp.concatenate(cols, axis=1)                 # (TR, n_fft) bf16

    # One wide MXU push: [re | im] in a single dot, f32 accumulation.
    ri = jnp.dot(frames, cs_ref[...], preferred_element_type=jnp.float32)
    re = ri[:, :f_pad]
    im = ri[:, f_pad:]
    mag = jnp.sqrt(re * re + im * im + 1e-6)                   # pow2_sqrt, f32 (v5e-safe)

    # mel matmul on the MXU in bf16 (f32 accumulation).
    mel = jnp.dot(mag.astype(jnp.bfloat16), fb_ref[...],
                  preferred_element_type=jnp.float32)
    out_ref[0] = jnp.log(jnp.maximum(mel, 1e-5))               # log-compress


# ----------------------------- module wrapper -----------------------------

class LogMelSpectrogramPallas:
    def __init__(self, sample_rate=44100, n_fft=2048, win_length=2048,
                 hop_length=512, n_mels=128, f_min=0.0, f_max=None,
                 frame_tile=512):
        assert win_length == n_fft, "kernel assumes win_length == n_fft (module defaults)"
        assert n_fft % hop_length == 0, "kernel assumes hop_length divides n_fft"
        self.sample_rate = sample_rate
        self.n_fft = n_fft
        self.win_length = win_length
        self.hop_length = hop_length
        self.ratio = n_fft // hop_length
        self.n_mels = n_mels
        self.f_min = f_min
        self.f_max = f_max or float(sample_rate // 2)
        self.frame_tile = frame_tile

        n_freqs = n_fft // 2 + 1
        window = hann_window_np(win_length)
        fb_full = melscale_fbanks_np(n_freqs, self.f_min, self.f_max, n_mels, sample_rate)

        # Trailing freq bins whose mel weights are all zero (e.g. Nyquist when f_max == sr/2)
        # contribute nothing -> drop them so the freq axis is an exact multiple of 128.
        n_f = n_freqs
        while n_f > 1 and not np.any(fb_full[n_f - 1]):
            n_f -= 1
        self.n_f = n_f
        f_pad = _round_up(n_f, 128)
        self.f_pad = f_pad

        cos_w, sin_w = windowed_rdft_np(n_fft, n_f, window)    # Hann folded in
        cs = np.zeros((n_fft, 2 * f_pad), np.float32)
        cs[:, :n_f] = cos_w
        cs[:, f_pad:f_pad + n_f] = sin_w
        fb_p = np.zeros((f_pad, n_mels), np.float32)
        fb_p[:n_f] = fb_full[:n_f]

        # bf16 MXU weights; accumulation stays f32 in-kernel.
        self.cs = jnp.asarray(cs).astype(jnp.bfloat16)         # (n_fft, 2*f_pad)
        self.fb = jnp.asarray(fb_p).astype(jnp.bfloat16)       # (f_pad, n_mels)

    # ---- glue: reflect-pad only (framing happens inside the kernel) ----
    def _pad_reflect(self, x):
        if x.ndim == 3:
            x = x[:, 0, :]
        x = x.astype(jnp.float32)
        pad_l = (self.win_length - self.hop_length) // 2
        pad_r = (self.win_length - self.hop_length + 1) // 2
        assert x.shape[-1] > max(pad_l, pad_r), "reflect padding requires T > (win-hop)//2"
        y = jnp.pad(x, ((0, 0), (pad_l, pad_r)), mode="reflect")
        n_frames = 1 + (y.shape[1] - self.n_fft) // self.hop_length
        # bf16 audio: halves HBM traffic and feeds the MXU directly.
        return y.astype(jnp.bfloat16), n_frames

    def __call__(self, x):
        y, n_frames = self._pad_reflect(x)
        B = y.shape[0]
        hop, ratio = self.hop_length, self.ratio

        # frames-per-tile (per batch row). Shrink for short inputs; keep >= ratio so a single
        # extra hop-row block always covers the overlapping STFT windows.
        tr = min(self.frame_tile, _round_up(n_frames, 8))
        tr = max(tr, _round_up(ratio, 8))
        n_tiles = _cdiv(n_frames, tr)
        # v7x megacore: prefer >= 2 parallel tiles in total.
        if B * n_tiles < 2 and n_frames > 8:
            tr = max(_round_up(ratio, 8), _round_up(_cdiv(n_frames, 2), 8))
            n_tiles = _cdiv(n_frames, tr)
        n_frames_pad = n_tiles * tr

        # hop-major view of the padded audio: y2[b, h, s] = y[b, h*hop + s].
        # Frame i == concat(y2[b, i], ..., y2[b, i + ratio - 1]); the kernel rebuilds each frame
        # tile from two adjacent auto-pipelined blocks, so the 4x-duplicated frames array is
        # never materialized in HBM.
        n_hops_total = (n_tiles + 1) * tr
        y = jnp.pad(y, ((0, 0), (0, n_hops_total * hop - y.shape[1])))
        y2 = y.reshape(B, n_hops_total, hop)

        kernel = functools.partial(_logmel_kernel, ratio=ratio, f_pad=self.f_pad)

        out = pl.pallas_call(
            kernel,
            out_shape=jax.ShapeDtypeStruct((B, n_frames_pad, self.n_mels), jnp.float32),
            grid_spec=pltpu.PrefetchScalarGridSpec(
                num_scalar_prefetch=0,
                grid=(B, n_tiles),
                in_specs=[
                    # audio hop-rows [j*TR, j*TR+TR) and [(j+1)*TR, (j+1)*TR+TR)
                    pl.BlockSpec((1, tr, hop), lambda b, j: (b, j, 0)),
                    pl.BlockSpec((1, tr, hop), lambda b, j: (b, j + 1, 0)),
                    # DFT + mel weights: constant block index -> fetched once, VMEM-resident.
                    pl.BlockSpec((self.n_fft, 2 * self.f_pad), lambda b, j: (0, 0)),
                    pl.BlockSpec((self.f_pad, self.n_mels), lambda b, j: (0, 0)),
                ],
                out_specs=pl.BlockSpec((1, tr, self.n_mels), lambda b, j: (b, j, 0)),
            ),
            compiler_params=pltpu.CompilerParams(
                dimension_semantics=("parallel", "parallel"),
                vmem_limit_bytes=48 * 1024 * 1024,
            ),
        )(y2, y2, self.cs, self.fb)

        out = out[:, :n_frames, :]
        # PyTorch convention: (B, n_mels, n_frames)
        return jnp.transpose(out, (0, 2, 1))


# ----------------------------- reference (pure JAX mirror) for sanity -----------------------------

def _reference(module: LogMelSpectrogramPallas, x):
    if x.ndim == 3:
        x = x[:, 0, :]
    x = x.astype(jnp.float32)
    pad_l = (module.win_length - module.hop_length) // 2
    pad_r = (module.win_length - module.hop_length + 1) // 2
    y = jnp.pad(x, ((0, 0), (pad_l, pad_r)), mode="reflect")
    y = y.astype(jnp.bfloat16).astype(jnp.float32)           # same bf16 audio quantization
    n_frames = 1 + (y.shape[1] - module.n_fft) // module.hop_length
    idx = (jnp.arange(n_frames)[:, None] * module.hop_length
           + jnp.arange(module.n_fft)[None, :])
    frames = y[:, idx]                                        # (B, n_frames, n_fft)
    cs = module.cs.astype(jnp.float32)                        # window folded in
    ri = jnp.einsum("btn,nk->btk", frames, cs, precision=jax.lax.Precision.HIGHEST)
    f_pad = module.f_pad
    re, im = ri[..., :f_pad], ri[..., f_pad:]
    mag = jnp.sqrt(re * re + im * im + 1e-6)
    mag = mag.astype(jnp.bfloat16).astype(jnp.float32)        # same bf16 mag quantization
    mel = jnp.einsum("btk,km->btm", mag, module.fb.astype(jnp.float32),
                     precision=jax.lax.Precision.HIGHEST)
    out = jnp.log(jnp.maximum(mel, 1e-5))
    return jnp.transpose(out, (0, 2, 1))


if __name__ == "__main__":
    # small, STFT-consistent shapes: batch=2, audio length=1024, n_fft=256, hop=64, n_mels=128
    B, T = 2, 1024
    module = LogMelSpectrogramPallas(sample_rate=16000, n_fft=256, win_length=256,
                                     hop_length=64, n_mels=128)

    key = jax.random.PRNGKey(0)
    x = jax.random.normal(key, (B, T), dtype=jnp.float32)

    out = jax.block_until_ready(module(x))

    ref = _reference(module, x)
    assert out.shape == ref.shape == (B, 128, 16), out.shape
    max_err = float(jnp.max(jnp.abs(out - ref)))
    assert jnp.allclose(out, ref, atol=5e-3, rtol=5e-3), max_err

    print("KERNEL_OK")
</pallas_src>

<mosaic_0001>
module attributes {stable_mosaic.version = 11 : i64} {
  func.func @_logmel_kernel(%arg0: i32, %arg1: i32, %arg2: memref<1x16x64xbf16, #tpu.memory_space<vmem>>, %arg3: memref<1x16x64xbf16, #tpu.memory_space<vmem>>, %arg4: memref<256x256xbf16, #tpu.memory_space<vmem>>, %arg5: memref<128x128xbf16, #tpu.memory_space<vmem>>, %arg6: memref<1x16x128xf32, #tpu.memory_space<vmem>>) attributes {dimension_semantics = [#tpu.dimension_semantics<parallel>, #tpu.dimension_semantics<parallel>], iteration_bounds = array<i64: 2, 1>, scalar_prefetch = 0 : i64, scratch_operands = 0 : i64, tpu.core_type = #tpu.core_type<tc>, window_params = [{transform_indices = @transform_0, window_bounds = array<i64: 1, 16, 64>}, {transform_indices = @transform_1, window_bounds = array<i64: 1, 16, 64>}, {pipeline_mode = #tpu.pipeline_mode<synchronous>, transform_indices = @transform_2, window_bounds = array<i64: 256, 256>}, {pipeline_mode = #tpu.pipeline_mode<synchronous>, transform_indices = @transform_3, window_bounds = array<i64: 128, 128>}, {transform_indices = @transform_4, window_bounds = array<i64: 1, 16, 128>}]} {
    %c0 = arith.constant 0 : index
    %c0_0 = arith.constant 0 : index
    %c0_1 = arith.constant 0 : index
    %0 = vector.load %arg2[%c0, %c0_0, %c0_1] : memref<1x16x64xbf16, #tpu.memory_space<vmem>>, vector<1x16x64xbf16>
    %1 = vector.shape_cast %0 : vector<1x16x64xbf16> to vector<16x64xbf16>
    %c0_2 = arith.constant 0 : index
    %c0_3 = arith.constant 0 : index
    %c0_4 = arith.constant 0 : index
    %2 = vector.load %arg3[%c0_2, %c0_3, %c0_4] : memref<1x16x64xbf16, #tpu.memory_space<vmem>>, vector<1x16x64xbf16>
    %3 = vector.shape_cast %2 : vector<1x16x64xbf16> to vector<16x64xbf16>
    %4 = vector.extract_strided_slice %1 {offsets = [1, 0], sizes = [15, 64], strides = [1, 1]} : vector<16x64xbf16> to vector<15x64xbf16>
    %5 = vector.extract_strided_slice %3 {offsets = [0, 0], sizes = [1, 64], strides = [1, 1]} : vector<16x64xbf16> to vector<1x64xbf16>
    %6 = tpu.concatenate %4, %5 in 0 : vector<15x64xbf16>, vector<1x64xbf16> -> vector<16x64xbf16>
    %7 = vector.extract_strided_slice %1 {offsets = [2, 0], sizes = [14, 64], strides = [1, 1]} : vector<16x64xbf16> to vector<14x64xbf16>
    %8 = vector.extract_strided_slice %3 {offsets = [0, 0], sizes = [2, 64], strides = [1, 1]} : vector<16x64xbf16> to vector<2x64xbf16>
    %9 = tpu.concatenate %7, %8 in 0 : vector<14x64xbf16>, vector<2x64xbf16> -> vector<16x64xbf16>
    %10 = vector.extract_strided_slice %1 {offsets = [3, 0], sizes = [13, 64], strides = [1, 1]} : vector<16x64xbf16> to vector<13x64xbf16>
    %11 = vector.extract_strided_slice %3 {offsets = [0, 0], sizes = [3, 64], strides = [1, 1]} : vector<16x64xbf16> to vector<3x64xbf16>
    %12 = tpu.concatenate %10, %11 in 0 : vector<13x64xbf16>, vector<3x64xbf16> -> vector<16x64xbf16>
    %13 = tpu.concatenate %1, %6, %9, %12 in 1 : vector<16x64xbf16>, vector<16x64xbf16>, vector<16x64xbf16>, vector<16x64xbf16> -> vector<16x256xbf16>
    %c0_5 = arith.constant 0 : index
    %c0_6 = arith.constant 0 : index
    %14 = vector.load %arg4[%c0_5, %c0_6] : memref<256x256xbf16, #tpu.memory_space<vmem>>, vector<256x256xbf16>
    %cst = arith.constant dense<0.000000e+00> : vector<16x256xf32>
    %15 = tpu.matmul %13, %14, %cst {dimension_numbers = #tpu.dot_dimension_numbers<[1], [0], [0], [1], [0, 0, 1, 1], [], []>} : vector<16x256xbf16>, vector<256x256xbf16>, vector<16x256xf32> -> vector<16x256xf32>
    %16 = vector.extract_strided_slice %15 {offsets = [0, 0], sizes = [16, 128], strides = [1, 1]} : vector<16x256xf32> to vector<16x128xf32>
    %17 = vector.extract_strided_slice %15 {offsets = [0, 128], sizes = [16, 128], strides = [1, 1]} : vector<16x256xf32> to vector<16x128xf32>
    %18 = arith.mulf %16, %16 : vector<16x128xf32>
    %19 = arith.mulf %17, %17 : vector<16x128xf32>
    %20 = arith.addf %18, %19 : vector<16x128xf32>
    %cst_7 = arith.constant 9.99999997E-7 : f32
    %21 = vector.broadcast %cst_7 : f32 to vector<16x128xf32>
    %22 = arith.addf %20, %21 : vector<16x128xf32>
    %23 = math.sqrt %22 : vector<16x128xf32>
    %24 = arith.truncf %23 : vector<16x128xf32> to vector<16x128xbf16>
    %c0_8 = arith.constant 0 : index
    %c0_9 = arith.constant 0 : index
    %25 = vector.load %arg5[%c0_8, %c0_9] : memref<128x128xbf16, #tpu.memory_space<vmem>>, vector<128x128xbf16>
    %cst_10 = arith.constant dense<0.000000e+00> : vector<16x128xf32>
    %26 = tpu.matmul %24, %25, %cst_10 {dimension_numbers = #tpu.dot_dimension_numbers<[1], [0], [0], [1], [0, 0, 1, 1], [], []>} : vector<16x128xbf16>, vector<128x128xbf16>, vector<16x128xf32> -> vector<16x128xf32>
    %cst_11 = arith.constant 9.99999974E-6 : f32
    %27 = vector.broadcast %cst_11 : f32 to vector<16x128xf32>
    %28 = arith.maximumf %26, %27 : vector<16x128xf32>
    %29 = math.log %28 : vector<16x128xf32>
    %c0_12 = arith.constant 0 : index
    %c0_13 = arith.constant 0 : index
    %c0_14 = arith.constant 0 : index
    %30 = vector.load %arg6[%c0_12, %c0_13, %c0_14] : memref<1x16x128xf32, #tpu.memory_space<vmem>>, vector<1x16x128xf32>
    %31 = vector.shape_cast %30 : vector<1x16x128xf32> to vector<16x128xf32>
    %32 = vector.shape_cast %29 : vector<16x128xf32> to vector<1x16x128xf32>
    tpu.vector_store %arg6[%c0_12, %c0_13, %c0_14], %32 {strides = array<i32>} : memref<1x16x128xf32, #tpu.memory_space<vmem>>, vector<1x16x128xf32>,
    return
  }
  func.func @transform_0(%arg0: i32, %arg1: i32) -> (i32, i32, i32) {
    %c0_i32 = arith.constant 0 : i32
    %c0_i32_0 = arith.constant 0 : i32
    return %arg0, %arg1, %c0_i32 : i32, i32, i32
  }
  func.func @transform_1(%arg0: i32, %arg1: i32) -> (i32, i32, i32) {
    %c1_i32 = arith.constant 1 : i32
    %0 = arith.addi %arg1, %c1_i32 : i32
    %c0_i32 = arith.constant 0 : i32
    %c0_i32_0 = arith.constant 0 : i32
    return %arg0, %0, %c0_i32 : i32, i32, i32
  }
  func.func @transform_2(%arg0: i32, %arg1: i32) -> (i32, i32) {
    %c0_i32 = arith.constant 0 : i32
    %c0_i32_0 = arith.constant 0 : i32
    %c0_i32_1 = arith.constant 0 : i32
    return %c0_i32, %c0_i32_0 : i32, i32
  }
  func.func @transform_3(%arg0: i32, %arg1: i32) -> (i32, i32) {
    %c0_i32 = arith.constant 0 : i32
    %c0_i32_0 = arith.constant 0 : i32
    %c0_i32_1 = arith.constant 0 : i32
    return %c0_i32, %c0_i32_0 : i32, i32
  }
  func.func @transform_4(%arg0: i32, %arg1: i32) -> (i32, i32, i32) {
    %c0_i32 = arith.constant 0 : i32
    %c0_i32_0 = arith.constant 0 : i32
    return %arg0, %arg1, %c0_i32 : i32, i32, i32
  }
}

</mosaic_0001>

<bundles_post_ra>
// kernel: tpu_custom_call.1
= control target key start
LH: loop header
LB: loop body
LE: loop exit
PB: predicated region body
PF: predicated region fallthrough
CT: control target
= control target key end

     0   :  { %s1742_s0 = inlined_call_operand.hbm [shape: bf16[2,32,64], index: 0, kind: input, shape index: {}]   ;;  %s1743_s1 = inlined_call_operand.hbm [shape: bf16[2,32,64], index: 1, kind: input, shape index: {}]   ;;  %s1744_s2 = inlined_call_operand.hbm [shape: bf16[256,256], index: 2, kind: input, shape index: {}]   ;;  %s1745_s3 = inlined_call_operand.hbm [shape: bf16[128,128], index: 3, kind: input, shape index: {}]   ;;  %s1746_s4 = inlined_call_operand.hbm [shape: f32[2,16,128], index: 4, kind: output, shape index: {}]  }
   0x1   :  { %1755 = sst [smem:[#allocation17_spill]] %s1744_s2 }
   0x2   :  { %1756 = sst [smem:[#allocation18_spill]] %s1745_s3 }
   0x3   :  { %9 = vsyncpa [#allocation3], 0 }
   0x4   :  { %11 = vsyncpa [#allocation3 + $0x1], 0 }
   0x5   :  { %12 = vsyncpa [#allocation6], 0 }
   0x6   :  { %14 = vsyncpa [#allocation6 + $0x1], 0 }
   0x7   :  { %15 = vsyncpa [#allocation9], 0 }
   0x8   :  { %16 = vsyncpa [#allocation4], 0 }
   0x9   :  { %18 = vsyncpa [#allocation4 + $0x1], 0  ;;  %s1408_s15 = smov 0   ;;  %s1410_s16 = smov 0  }
   0xa   :  { %s1412_s17 = smov 0   ;;  %s1414_s18 = smov 0  }
   0xb   :  { %s1416_s19 = smov 0   ;;  %s1418_s20 = smov 0  }
   0xc LB: > { %s1439_s21 = sadd.s32 4294967295, %s1367_s20   ;;  %s897_s22 = sadd.s32 4294967294, %s1367_s20   ;;  %s1367_s20 = sphi %s1418_s20, %s24_s20   ;;  %s1363_s19 = sphi %s1416_s19, %s1782_s19   ;;  %s1359_s18 = sphi %s1414_s18, %s1781_s18   ;;  %s1355_s17 = sphi %s1412_s17, %s1780_s17   ;;  %s1351_s16 = sphi %s1410_s16, %s1779_s16   ;;  %s1347_s15 = sphi %s1408_s15, %s1778_s15  }
   0xd   : > { %p58_p0 = scmp.ne.s32.totalorder %s1351_s16, %s1347_s15  ;;  %p1747_p1 = scmp.eq.s32.totalorder %s1439_s21, 0 }
   0xe   : > { %p162_p3 = scmp.eq.s32.totalorder %s897_s22, 1  ;;  %p898_p5 = scmp.ge.s32.totalorder %s1367_s20, 1 }
   0xf   : > { %p1448_p4 = por %p1747_p1, %p58_p0  ;;  %p169_p7 = scmp.lt.s32.totalorder %s1367_s20, 3 }
  0x10   : > { %p1453_p6 = por %p162_p3, %p58_p0  ;;  %s1369_s26 = smov [#allocation7]  }
  0x11   : > { %s1757_s23 = scalar_select %p1448_p4, 1, 0 }
  0x12   : > { %s1758_s24 = scalar_select %p1453_p6, 1, 0 }
  0x13   : > { %p1458_p8 = pnand %p898_p5, %p169_p7  ;;  %s181_s27 = sshll.u32 %s1369_s26, 4  ;;  %s1462_s27 = int_to_ptr.vmem [resolvable:$true] %s181_s27 }
  0x14   : > { %s1370_s29 = smov [#allocation8]   ;;  %s1761_s2 = sld [smem:[#allocation17_spill]] }
  0x15   : > { %p1007_p9 = pneg %p1458_p8  ;;  %s194_s30 = sshll.u32 %s1370_s29, 4  ;;  %s1473_s30 = int_to_ptr.vmem [resolvable:$true] %s194_s30 }
  0x17   : > { %p1469_p11 = pnand %p1007_p9, %p1747_p1 }
  0x19   : > { %p1158_p13 = pneg %p1469_p11 }
  0x1a   : > { %s1156_s7 = scalar_lea.hbm %s1761_s2, 4096 }
  0x1b   : > { %p1157_p12 = scmp.ne.s32.totalorder %s1761_s2, %s1156_s7  ;;  %p1163_p5 = scmp.lt.u32.totalorder %s1156_s7, %s1761_s2 }
  0x1d   : > { %p1159_p0 = pnand %p1158_p13, %p1157_p12 }
  0x1f   : > { %p1160_p3 = pneg %p1159_p0 }
  0x21   : > { %p1165_p7 = pnand %p1163_p5, %p1160_p3 }
  0x23   : > { %1168 = shalt.err (!%p1165_p7)
}
  0x24   : > { %s1169_s12 = scalar_lea.vmem %s1462_s27, 4096  ;;  %p1177_p2 = scmp.lt.s32.totalorder %s1462_s27, %s1462_s27 }
  0x25   : > { %p1170_p9 = scmp.ne.s32.totalorder %s1462_s27, %s1169_s12  ;;  %p1178_p12 = scmp.lt.s32.totalorder %s1169_s12, %s1169_s12 }
  0x27   : > { %p1172_p10 = pnand %p1170_p9, %p1158_p13  ;;  %p1179_p0 = por %p1178_p12, %p1177_p2 }
  0x29   : > { %p1173_p1 = pneg %p1172_p10 }
  0x2b   : > { %p1180_p6 = pnand %p1179_p0, %p1173_p1 }
  0x2d   : > { %1183 = shalt.err (!%p1180_p6)
}
  0x2e   : > { %s1371_s13 = smov 128   ;;  %s1372_s14 = smov 8  }
  0x2f   : > { %1010 = dma.hbm_to_vmem [thread:$0]  (!%p1469_p11), %s1761_s2, 4096, %s1462_s27, [#allocation6], %s1371_s13, %s1371_s13, %s1372_s14  }
  0x30   : > { %s1762_s3 = sld [smem:[#allocation18_spill]] }
  0x36   : > { %s1184_s6 = scalar_lea.hbm %s1762_s3, 1024 }
  0x37   : > { %p1185_p2 = scmp.ne.s32.totalorder %s1762_s3, %s1184_s6  ;;  %p1191_p10 = scmp.lt.u32.totalorder %s1184_s6, %s1762_s3 }
  0x39   : > { %p1187_p1 = pnand %p1185_p2, %p1158_p13 }
  0x3b   : > { %p1188_p6 = pneg %p1187_p1 }
  0x3d   : > { %p1193_p3 = pnand %p1191_p10, %p1188_p6 }
  0x3f   : > { %1196 = shalt.err (!%p1193_p3)
}
  0x40   : > { %s1197_s27 = scalar_lea.vmem %s1473_s30, 1024  ;;  %p1205_p12 = scmp.lt.s32.totalorder %s1473_s30, %s1473_s30 }
  0x41   : > { %p1198_p5 = scmp.ne.s32.totalorder %s1473_s30, %s1197_s27  ;;  %p1206_p0 = scmp.lt.s32.totalorder %s1197_s27, %s1197_s27 }
  0x43   : > { %p1200_p7 = pnand %p1198_p5, %p1158_p13  ;;  %p1207_p2 = por %p1206_p0, %p1205_p12 }
  0x45   : > { %p1201_p9 = pneg %p1200_p7 }
  0x47   : > { %p1208_p1 = pnand %p1207_p2, %p1201_p9 }
  0x49   : > { %1211 = shalt.err (!%p1208_p1)
}
  0x4a   : > { %s1748_s11 = smov 64   ;;  %s1750_s12 = smov 4  }
  0x4b   : > { %1013 = dma.hbm_to_vmem [thread:$0]  (!%p1469_p11), %s1762_s3, 1024, %s1473_s30, [#allocation9], %s1748_s11, %s1748_s11, %s1750_s12  }
  0x4c   : > { %s36_s22 = sadd.s32 1, %s1363_s19  ;;  %s45_s26 = sadd.s32 1, %s1355_s17 }
  0x4d   : > { %p38_p13 = scmp.ge.s32.totalorder %s36_s22, 2  ;;  %p52_p6 = scmp.ne.s32.totalorder %s1355_s17, %s1351_s16 }
  0x4e   : > { %p53_p10 = scmp.eq.s32.totalorder %s1367_s20, 0  ;;  %p1027_p3 = scmp.lt.s32.totalorder %s1367_s20, 2 }
  0x4f   : > { %s1784_s22 = smov (%p38_p13, %s36_s22), 0  ;;  %p1764_p7 = scmp.eq.s32.totalorder %s1439_s21, 1 }
  0x50   : > { %1763 = sst [smem:[#allocation16_spill]] %s1784_s22  ;;  %p54_p5 = por %p53_p10, %p52_p6 }
  0x51   : > { %p1540_p9 = por %p1764_p7, %p52_p6  ;;  %s40_s29 = ssub.s32 %s1363_s19, %s1784_s22 }
  0x52   : > { %s208_s5 = sand.u32 1, %s1355_s17   ;;  %p43_p12 = scmp.eq.s32.totalorder %s40_s29, 0 }
  0x53   : > { %s1765_s28 = scalar_select %p1540_p9, 1, 0 }
  0x54   : > { %s1547_s30 = sshll.u32 %s208_s5, 3  ;;  %s961_s6 = sshll.u32 %s1363_s19, 8 }
  0x55   : > { %s1551_s7 = scalar_select %p43_p12, %s1355_s17, %s45_s26  }
  0x56   : > { %s1556_s10 = scalar_lea.hbm %s1742_s0, %s961_s6  ;;  %s212_s27 = scalar_lea.vmem [#allocation2], %s1547_s30 }
  0x57   : > { %s221_s13 = sshll.u32 %s212_s27, 4  ;;  %p1561_p11 = pnand %p1027_p3, %p54_p5  ;;  %s1565_s13 = int_to_ptr.vmem [resolvable:$true] %s221_s13 }
  0x58   : > { %s1570_s8 = scalar_lea.hbm %s1743_s1, %s961_s6  ;;  %s1572_s9 = scalar_lea.sflag [#allocation3], %s208_s5 }
  0x59   : > { %s1212_s11 = scalar_lea.hbm %s1556_s10, 128  ;;  %p1214_p2 = pneg %p1561_p11 }
  0x5a   : > { %p1213_p0 = scmp.ne.s32.totalorder %s1556_s10, %s1212_s11  ;;  %s1217_s2 = scalar_lea.hbm %s1742_s0, 512 }
  0x5b   : > { %p1218_p6 = scmp.lt.u32.totalorder %s1556_s10, %s1742_s0  ;;  %p1219_p10 = scmp.lt.u32.totalorder %s1217_s2, %s1212_s11 }
  0x5c   : > { %p1215_p1 = pnand %p1214_p2, %p1213_p0  ;;  %p1221_p5 = scmp.lt.u32.totalorder %s1212_s11, %s1556_s10 }
  0x5d   : > { %p1220_p3 = por %p1219_p10, %p1218_p6 }
  0x5e   : > { %p1216_p13 = pneg %p1215_p1 }
  0x5f   : > { %p1222_p7 = por %p1221_p5, %p1220_p3 }
  0x61   : > { %p1223_p12 = pnand %p1222_p7, %p1216_p13 }
  0x63   : > { %1226 = shalt.err (!%p1223_p12)
}
  0x64   : > { %s1227_s5 = scalar_lea.vmem %s1565_s13, 128  ;;  %s1375_s12 = smov [#allocation2]  }
  0x65   : > { %p1228_p0 = scmp.ne.s32.totalorder %s1565_s13, %s1227_s5  ;;  %s1232_s6 = sshll.u32 %s1375_s12, 4  ;;  %s1233_s6 = int_to_ptr.vmem [resolvable:$false] %s1232_s6 }
  0x66   : > { %s1234_s3 = scalar_lea.vmem %s1233_s6, 256  ;;  %p1235_p4 = scmp.lt.s32.totalorder %s1565_s13, %s1233_s6 }
  0x67   : > { %p1230_p1 = pnand %p1228_p0, %p1214_p2  ;;  %p1236_p6 = scmp.lt.s32.totalorder %s1234_s3, %s1227_s5 }
  0x69   : > { %p1231_p9 = pneg %p1230_p1  ;;  %p1237_p10 = por %p1236_p6, %p1235_p4 }
  0x6b   : > { %p1238_p3 = pnand %p1237_p10, %p1231_p9 }
  0x6d   : > { %1241 = shalt.err (!%p1238_p3)
}
  0x6e   : > { %s1767_s2 = smov 4   ;;  %s1768_s11 = smov 64  }
  0x6f   : > { %1017 = dma.hbm_to_vmem [thread:$0]  (!%p1561_p11), %s1556_s10, 128, %s1565_s13, %s1572_s9, %s1768_s11, %s1768_s11, %s1767_s2  }
  0x70   : > { %s1604_s22 = scalar_lea.hbm %s1570_s8, 128  ;;  %s235_s26 = scalar_lea.vmem [#allocation5], %s1547_s30 }
  0x71   : > { %s245_s29 = sshll.u32 %s235_s26, 4  ;;  %s231_s27 = sand.u32 1, %s1367_s20   ;;  %s1607_s29 = int_to_ptr.vmem [resolvable:$true] %s245_s29 }
  0x72   : > { %s1610_s5 = scalar_lea.sflag [#allocation6], %s231_s27  ;;  %s1272_s12 = scalar_lea.hbm %s1570_s8, 256 }
  0x73   : > { %p1243_p4 = scmp.ne.s32.totalorder %s1604_s22, %s1272_s12  ;;  %s1247_s13 = scalar_lea.hbm %s1743_s1, 512 }
  0x74   : > { %p1248_p5 = scmp.lt.u32.totalorder %s1604_s22, %s1743_s1  ;;  %p1249_p7 = scmp.lt.u32.totalorder %s1247_s13, %s1272_s12 }
  0x75   : > { %p1245_p9 = pnand %p1243_p4, %p1214_p2  ;;  %p1251_p0 = scmp.lt.u32.totalorder %s1272_s12, %s1604_s22 }
  0x76   : > { %p1250_p12 = por %p1249_p7, %p1248_p5 }
  0x77   : > { %p1246_p13 = pneg %p1245_p9 }
  0x78   : > { %p1252_p1 = por %p1251_p0, %p1250_p12 }
  0x7a   : > { %p1253_p6 = pnand %p1252_p1, %p1246_p13 }
  0x7c   : > { %1256 = shalt.err (!%p1253_p6)
}
  0x7d   : > { %s1257_s30 = scalar_lea.vmem %s1607_s29, 128  ;;  %s1376_s8 = smov [#allocation5]  }
  0x7e   : > { %p1258_p10 = scmp.ne.s32.totalorder %s1607_s29, %s1257_s30  ;;  %s1262_s26 = sshll.u32 %s1376_s8, 4  ;;  %s1263_s26 = int_to_ptr.vmem [resolvable:$false] %s1262_s26 }
  0x7f   : > { %s1264_s27 = scalar_lea.vmem %s1263_s26, 256  ;;  %p1265_p9 = scmp.lt.s32.totalorder %s1607_s29, %s1263_s26 }
  0x80   : > { %p1260_p3 = pnand %p1258_p10, %p1214_p2  ;;  %p1266_p5 = scmp.lt.s32.totalorder %s1264_s27, %s1257_s30 }
  0x82   : > { %p1261_p4 = pneg %p1260_p3  ;;  %p1267_p7 = por %p1266_p5, %p1265_p9 }
  0x84   : > { %p1268_p12 = pnand %p1267_p7, %p1261_p4 }
  0x86   : > { %1271 = shalt.err (!%p1268_p12)
}
  0x87   : > { %1020 = dma.hbm_to_vmem [thread:$0]  (!%p1561_p11), %s1604_s22, 128, %s1607_s29, %s1610_s5, %s1768_s11, %s1768_s11, %s1767_s2  }
  0x88   : > { %257 = sbr.rel (%p1458_p8) target bundleno = 765 (0x2fd), region = 36  ;;  %s1642_s12 = sand.u32 (!%p1458_p8), 1, %s1351_s16  }
  0x89   : > { %s909_s6 = sshll.u32 (!%p1458_p8), %s1642_s12, 3  ;;  %s260_s10 = scalar_lea.sflag (!%p1458_p8), [#allocation3], %s1642_s12 }
  0x8a   : > { %s263_s13 = scalar_lea.vmem (!%p1458_p8), [#allocation2], %s909_s6  ;;  %p1769_p2 = scmp.ne.s32.totalorder (!%p1458_p8), %s1757_s23, 0 }
  0x8f   : > { %1326 = dma.done.wait (%p1769_p2), %s260_s10, 128  }
  0x90   : > { %1328 = vsyncadd (%p1769_p2), %s260_s10, 4294967168  ;;  %s268_s14 = sand.u32 1, %s1439_s21   ;;  %s272_s25 = scalar_lea.vmem [#allocation5], %s909_s6 }
  0x91   : > { %s269_s2 = scalar_lea.sflag [#allocation6], %s268_s14 }
  0x92   : > { %1330 = dma.done.wait (%p1769_p2), %s269_s2, 128  }
  0x93   : > { %1332 = vsyncadd (%p1769_p2), %s269_s2, 4294967168  ;;  %p1770_p8 = scmp.eq.s32.totalorder %s1439_s21, 0 }
  0x95   : > { %1334 = dma.done.wait (%p1770_p8), [#allocation6], 4096   ;;  %p1771_p11 = pmov %p1770_p8 }
  0x96   : > { %p1772_p13 = pmov %p1770_p8 }
  0x97   : > { %1336 = vsyncadd (%p1771_p11), [#allocation6], 4294963200 }
  0x98   : > { %1338 = dma.done.wait (%p1772_p13), [#allocation9], 1024   ;;  %p1773_p0 = pmov %p1770_p8 }
  0x99   : > { %vm345_vm0 = vcmask 1046528   ;;  %vm360_vm1 = vsmask.f32 6400  ;;  %vm339_vm2 = vcmask 1047552   ;;  %v1663_v0 = vld [vmem:[%s263_s13] sm:$0xff]   ;;  %v1377_v8 = vmov 0.0  }
  0x9a   : > { %1340 = vsyncadd (%p1773_p0), [#allocation9], 4294966272  ;;  %v1091_v1 = vld [vmem:[%s272_s25] ss:$0 sps:$4 sm:$0xff]   ;;  %vm340_vm3 = vsmask.f32 7424  ;;  %973 = vmatprep.subr.bf16.mxu1 %v1377_v8 }
  0x9b   : > { %v1092_v2 = vld [vmem:[#allocation7 + $0x4] ss:$8 sps:$4 sm:$0xff]   ;;  %v1094_v3 = vld [vmem:[#allocation7] ss:$8 sps:$4 sm:$0xff]   ;;  %v324_v4 = vshrl.u32 %v1663_v0, 16  ;;  %v326_v5 = vshll.u32 %v1663_v0, 16  ;;  %vm361_vm4 = vmand %vm345_vm0, %vm360_vm1 }
  0x9c   : > { %v335_v6 = vshll.u32 %v1091_v1, 16  ;;  %v353_v7 = vshrl.u32 %v1091_v1, 16  ;;  %568 = vmatprep.subr.bf16.mxu0 %v1092_v2  ;;  %v1095_v9 = vld [vmem:[#allocation7 + $0x14] ss:$8 sps:$4 sm:$0xff]   ;;  %v1097_v10 = vld [vmem:[#allocation7 + $0x10] ss:$8 sps:$4 sm:$0xff]   ;;  %vm341_vm5 = vmand %vm339_vm2, %vm340_vm3 }
  0x9d   : > { %v343_v11 = vrot.slane %v1663_v0, 1  ;;  %v349_v12 = vrot.slane %v324_v4, 1  ;;  %v350_v13 = vrot.slane %v326_v5, 2  ;;  %569 = vmatpush1.bf16.msra.mxu0 %v1094_v3  ;;  %v328_v16 = vrot.slane %v326_v5, 1  ;;  %v1098_v17 = vld [vmem:[#allocation7 + $0x24] ss:$8 sps:$4 sm:$0xff]  }
  0x9e   : > { %v355_v14 = vrot.slane %v353_v7, 1  ;;  %v356_v15 = vrot.slane %v335_v6, 2  ;;  %570 = vmatprep.subr.bf16.mxu0 %v1095_v9  ;;  %v337_v20 = vrot.slane %v335_v6, 1  ;;  %v344_v21 = vrot.slane %v1091_v1, 1  ;;  %v1100_v24 = vld [vmem:[#allocation7 + $0x20] ss:$8 sps:$4 sm:$0xff]  }
  0x9f   : > { %v351_v18 = vor.u32 %v350_v13, %v349_v12  ;;  %v329_v22 = vor.u32 %v328_v16, %v324_v4  ;;  %s1378_s21 = smov 64   ;;  %v1101_v26 = vld [vmem:[#allocation7 + $0x34] ss:$8 sps:$4 sm:$0xff]   ;;  %v1103_v28 = vld [vmem:[#allocation7 + $0x30] ss:$8 sps:$4 sm:$0xff]   ;;  %v1140_v36 = vld [vmem:[#allocation8] sm:$0xff]  }
  0xa0   : > { %v357_v19 = vor.u32 %v356_v15, %v355_v14  ;;  %v1674_v25 = vsel %vm345_vm0, %v343_v11, %v344_v21  ;;  %v1104_v29 = vld [vmem:[#allocation7 + $0x44] ss:$8 sps:$4 sm:$0xff]   ;;  %v1106_v30 = vld [vmem:[#allocation7 + $0x40] ss:$8 sps:$4 sm:$0xff]   ;;  %v1107_v31 = vld [vmem:[#allocation7 + $0x54] ss:$8 sps:$4 sm:$0xff]   ;;  %974 = vmatpush3.bf16.msra.mxu1 %v1140_v36 }
  0xa1   : > { %571 = vmatpush1.bf16.msra.mxu0 %v1097_v10  ;;  %v342_v27 = vsel %vm341_vm5, %v329_v22, %v337_v20  ;;  %v1109_v32 = vld [vmem:[#allocation7 + $0x50] ss:$8 sps:$4 sm:$0xff]   ;;  %v1110_v33 = vld [vmem:[#allocation7 + $0x64] ss:$8 sps:$4 sm:$0xff]   ;;  %v1112_v34 = vld [vmem:[#allocation7 + $0x60] ss:$8 sps:$4 sm:$0xff]   ;;  %975 = vmatprep.subr.bf16.mxu1 %v1377_v8 }
  0xa2   : > { %v362_v23 = vsel %vm361_vm4, %v351_v18, %v357_v19  ;;  %572 = vmatprep.subr.bf16.mxu0 %v1098_v17  ;;  %v1113_v35 = vld [vmem:[#allocation7 + $0x74] ss:$8 sps:$4 sm:$0xff]   ;;  %v1115_v37 = vld [vmem:[#allocation7 + $0x70] ss:$8 sps:$4 sm:$0xff]   ;;  %v1116_v38 = vld [vmem:[#allocation7 + $0x84] ss:$8 sps:$4 sm:$0xff]  }
  0xa3   : > { %367 = vrot.lane.b32.xlu0 %v362_v23, %s1378_s21  ;;  %v1118_v39 = vld [vmem:[#allocation7 + $0x80] ss:$8 sps:$4 sm:$0xff]   ;;  %v1119_v40 = vld [vmem:[#allocation7 + $0x94] ss:$8 sps:$4 sm:$0xff]   ;;  %v1121_v41 = vld [vmem:[#allocation7 + $0x90] ss:$8 sps:$4 sm:$0xff]  }
  0xa4   : > { %v1122_v42 = vld [vmem:[#allocation7 + $0xa4] ss:$8 sps:$4 sm:$0xff]   ;;  %v1124_v43 = vld [vmem:[#allocation7 + $0xa0] ss:$8 sps:$4 sm:$0xff]   ;;  %v1125_v44 = vld [vmem:[#allocation7 + $0xb4] ss:$8 sps:$4 sm:$0xff]  }
  0xa5   : > { %573 = vmatpush1.bf16.msra.mxu0 %v1100_v24  ;;  %v1127_v45 = vld [vmem:[#allocation7 + $0xb0] ss:$8 sps:$4 sm:$0xff]   ;;  %v1128_v46 = vld [vmem:[#allocation7 + $0xc4] ss:$8 sps:$4 sm:$0xff]   ;;  %v1130_v47 = vld [vmem:[#allocation7 + $0xc0] ss:$8 sps:$4 sm:$0xff]  }
  0xa6   : > { %574 = vmatprep.subr.bf16.mxu0 %v1101_v26  ;;  %v1131_v48 = vld [vmem:[#allocation7 + $0xd4] ss:$8 sps:$4 sm:$0xff]   ;;  %v1133_v49 = vld [vmem:[#allocation7 + $0xd0] ss:$8 sps:$4 sm:$0xff]   ;;  %v1134_v50 = vld [vmem:[#allocation7 + $0xe4] ss:$8 sps:$4 sm:$0xff]  }
  0xa7   : > { %364 = vrot.lane.b32.xlu0 %v342_v27, %s1378_s21  ;;  %v1136_v51 = vld [vmem:[#allocation7 + $0xe0] ss:$8 sps:$4 sm:$0xff]   ;;  %v1137_v52 = vld [vmem:[#allocation7 + $0xf4] ss:$8 sps:$4 sm:$0xff]   ;;  %v1139_v53 = vld [vmem:[#allocation7 + $0xf0] ss:$8 sps:$4 sm:$0xff]  }
  0xa8   : > { %vm369_vm6 = vcmask 523264   ;;  %v1141_v58 = vld [vmem:[#allocation8 + $0x8] sm:$0xff]   ;;  %v1142_v59 = vld [vmem:[#allocation8 + $0x10] sm:$0xff]   ;;  %v1143_v60 = vld [vmem:[#allocation8 + $0x18] sm:$0xff]   ;;  %vm1379_vm7 = vmmov 0   ;;  %s913_s23 = sshll.u32 %s1642_s12, 4 }
  0xa9   : > { %575 = vmatpush1.bf16.msra.mxu0 %v1103_v28  ;;  %976 = vmatpush3.bf16.msra.mxu1 %v1141_v58  ;;  %v1144_v61 = vld [vmem:[#allocation8 + $0x20] sm:$0xff]   ;;  %v1145_v62 = vld [vmem:[#allocation8 + $0x28] sm:$0xff]   ;;  %v1146_v63 = vld [vmem:[#allocation8 + $0x30] sm:$0xff]   ;;  %s309_s11 = scalar_lea.vmem [#allocation10], %s913_s23  ;;  %s963_s29 = sshll.u32 %s1359_s18, 8 }
  0xaa   : > { %576 = vmatprep.subr.bf16.mxu0 %v1104_v29  ;;  %977 = vmatprep.subr.bf16.mxu1 %v1377_v8  ;;  %s763_s22 = sshll.u32 %s309_s11, 4  ;;  %s1693_s3 = scalar_lea.hbm %s1746_s4, %s963_s29  ;;  %s1688_s22 = int_to_ptr.vmem [resolvable:$true] %s763_s22 }
  0xab   : > { %989 = vmatprep.mubr.msk.bf16.mxu1 %vm1379_vm7, %v1377_v8  ;;  %s748_s30 = scalar_lea.sflag [#allocation4], %s1642_s12  ;;  %s1273_s8 = scalar_lea.vmem %s1688_s22, 256 }
  0xac   : > { %p1274_p1 = scmp.ne.s32.totalorder %s1688_s22, %s1273_s8  ;;  %p1774_p6 = scmp.ne.s32.totalorder %s1765_s28, 0 }
  0xad   : > { %577 = vmatpush1.bf16.msra.mxu0 %v1106_v30  ;;  %978 = vmatpush3.bf16.msra.mxu1 %v1142_v59  ;;  %s1380_s18 = smov [#allocation10]  }
  0xae   : > { %578 = vmatprep.subr.bf16.mxu0 %v1107_v31  ;;  %979 = vmatprep.subr.bf16.mxu1 %v1377_v8  ;;  %p1275_p10 = pnand %p1274_p1, %p1774_p6  ;;  %s1277_s26 = sshll.u32 %s1380_s18, 4  ;;  %s1278_s26 = int_to_ptr.vmem [resolvable:$false] %s1277_s26 }
  0xaf   : > { %s1279_s27 = scalar_lea.vmem %s1278_s26, 512  ;;  %p1280_p4 = scmp.lt.s32.totalorder %s1688_s22, %s1278_s26 }
  0xb0   : > { %p1276_p3 = pneg %p1275_p10  ;;  %p1281_p9 = scmp.lt.s32.totalorder %s1279_s27, %s1273_s8 }
  0xb1   : > { %579 = vmatpush1.bf16.msra.mxu0 %v1109_v32  ;;  %980 = vmatpush3.bf16.msra.mxu1 %v1143_v60 }
  0xb2   : > { %580 = vmatprep.subr.bf16.mxu0 %v1110_v33  ;;  %981 = vmatprep.subr.bf16.mxu1 %v1377_v8  ;;  %p1282_p5 = por %p1281_p9, %p1280_p4 }
  0xb4   : > { %p1283_p7 = pnand %p1282_p5, %p1276_p3 }
  0xb5   : > { %581 = vmatpush1.bf16.msra.mxu0 %v1112_v34  ;;  %982 = vmatpush3.bf16.msra.mxu1 %v1144_v61 }
  0xb6   : > { %582 = vmatprep.subr.bf16.mxu0 %v1113_v35  ;;  %983 = vmatprep.subr.bf16.mxu1 %v1377_v8 }
  0xb9   : > { %583 = vmatpush1.bf16.msra.mxu0 %v1115_v37  ;;  %984 = vmatpush3.bf16.msra.mxu1 %v1145_v62 }
  0xba   : > { %584 = vmatprep.subr.bf16.mxu0 %v1116_v38  ;;  %985 = vmatprep.subr.bf16.mxu1 %v1377_v8 }
  0xbd   : > { %585 = vmatpush1.bf16.msra.mxu0 %v1118_v39  ;;  %986 = vmatpush3.bf16.msra.mxu1 %v1146_v63 }
  0xbe   : > { %586 = vmatprep.subr.bf16.mxu0 %v1119_v40  ;;  %987 = vmatprep.subr.bf16.mxu1 %v1377_v8 }
  0xc1   : > { %587 = vmatpush1.bf16.msra.mxu0 %v1121_v41 }
  0xc2   : > { %588 = vmatprep.subr.bf16.mxu0 %v1122_v42 }
  0xc5   : > { %589 = vmatpush1.bf16.msra.mxu0 %v1124_v43 }
  0xc6   : > { %590 = vmatprep.subr.bf16.mxu0 %v1125_v44 }
  0xc9   : > { %591 = vmatpush1.bf16.msra.mxu0 %v1127_v45 }
  0xca   : > { %592 = vmatprep.subr.bf16.mxu0 %v1128_v46 }
  0xcd   : > { %593 = vmatpush1.bf16.msra.mxu0 %v1130_v47 }
  0xce   : > { %594 = vmatprep.subr.bf16.mxu0 %v1131_v48 }
  0xd1   : > { %595 = vmatpush1.bf16.msra.mxu0 %v1133_v49 }
  0xd2   : > { %596 = vmatprep.subr.bf16.mxu0 %v1134_v50 }
  0xd5   : > { %597 = vmatpush1.bf16.msra.mxu0 %v1136_v51 }
  0xd6   : > { %598 = vmatprep.subr.bf16.mxu0 %v1137_v52 }
  0xd9   : > { %599 = vmatpush1.bf16.msra.mxu0 %v1139_v53 }
 0x115   : > { %v368_v54 = vpop.permute.xlu0 %367 }
 0x116   : > { %v374_v55 = vsel %vm369_vm6, %v1674_v25, %v368_v54 }
 0x117   : > { %600 = vmatprep.mubr.bf16.mxu0 %v374_v55 }
 0x119   : > { %v365_v56 = vpop.permute.xlu0 %364 }
 0x11a   : > { %v371_v57 = vsel %vm369_vm6, %v1663_v0, %v365_v56  ;;  %v1147_v0 = vld [vmem:[#allocation8 + $0x38] sm:$0xff]  }
 0x11b   : > { %601 = vmatmul.mubr.bf16.vlgmr.msra.gmra.mrb[0].mxu0 %v371_v57  ;;  %988 = vmatpush3.bf16.msra.mxu1 %v1147_v0 }
 0x1ee   : > { %v602_v1 = vpop.f32.mrb[0].mxu0 }
 0x1ef   : > { %v611_v2 = vmul.f32 %v602_v1, %v602_v1  ;;  %v604_v3 = vpop.f32.mrb[1].mxu0 }
 0x1f0   : > { %v613_v4 = vmul.f32 %v604_v3, %v604_v3  ;;  %v606_v5 = vpop.f32.mrb[2].mxu0 }
 0x1f1   : > { %v612_v6 = vmul.f32 %v606_v5, %v606_v5  ;;  %v608_v7 = vpop.f32.mrb[3].mxu0 }
 0x1f2   : > { %v615_v9 = vadd.f32 %v613_v4, %v611_v2  ;;  %v614_v10 = vmul.f32 %v608_v7, %v608_v7 }
 0x1f4   : > { %v617_v11 = vadd.f32 1e-06, %v615_v9  ;;  %v616_v12 = vadd.f32 %v614_v10, %v612_v6 }
 0x1f6   : > { %1148 = vrsqrt.f32 %v617_v11  ;;  %v618_v13 = vadd.f32 1e-06, %v616_v12  ;;  %vm621_vm8 = vcmp.eq.f32.partialorder %v617_v11, inf  ;;  %v624_v18 = vand.u32 2147483648, %v617_v11 }
 0x1f7   : > { %vm623_vm10 = vcmp.eq.f32.partialorder %v617_v11, 0.0 }
 0x1f8   : > { %1150 = vrsqrt.f32 %v618_v13  ;;  %vm628_vm9 = vcmp.eq.f32.partialorder %v618_v13, inf  ;;  %v631_v19 = vand.u32 2147483648, %v618_v13  ;;  %vm630_vm11 = vcmp.eq.f32.partialorder %v618_v13, 0.0 }
 0x200   : > { %v1149_v14 = vpop.eup %1148 }
 0x201   : > { %v620_v15 = vmul.f32 %v1149_v14, %v617_v11 }
 0x202   : > { %v1151_v16 = vpop.eup %1150 }
 0x203   : > { %v622_v8 = vsel %vm621_vm8, %v617_v11, %v620_v15  ;;  %v627_v17 = vmul.f32 %v1151_v16, %v618_v13 }
 0x204   : > { %v625_v21 = vsel %vm623_vm10, %v624_v18, %v622_v8 }
 0x205   : > { %v629_v20 = vsel %vm628_vm9, %v618_v13, %v627_v17 }
 0x206   : > { %v632_v22 = vsel %vm630_vm11, %v631_v19, %v629_v20 }
 0x207   : > { %v633_v23 = vpack.c.bf16 %v632_v22, %v625_v21 }
 0x209   : > { %990 = vmatmul.mubr.bf16.vlgmr.msra.gmra.mrb[0].mxu1 %v633_v23 }
 0x2dc   : > { %v732_v24 = vpop.f32.mrb[0].mxu1 }
 0x2dd   : > { %v739_v25 = vmax.f32 %v732_v24, 1e-05  ;;  %v991_v26 = vpop.f32.mrb[1].mxu1 }
 0x2de   : > { %v735_v27 = vpop.f32.mrb[2].mxu1 }
 0x2df   : > { %1152 = vlog2.f32 %v739_v25  ;;  %v740_v28 = vmax.f32 %v735_v27, 1e-05  ;;  %v992_v29 = vpop.f32.mrb[3].mxu1 }
 0x2e1   : > { %1154 = vlog2.f32 %v740_v28 }
 0x2e9   : > { %v1153_v30 = vpop.eup %1152 }
 0x2ea   : > { %v742_v31 = vmul.f32 0.6931472, %v1153_v30 }
 0x2eb   : > { %v1155_v32 = vpop.eup %1154 }
 0x2ec   : > { %745 = vst [vmem:[%s309_s11] sm:$0xff] %v742_v31  ;;  %v744_v33 = vmul.f32 0.6931472, %v1155_v32 }
 0x2ee   : > { %746 = vst [vmem:[%s309_s11 + $0x8] sm:$0xff] %v744_v33 }
 0x2ef   : > { %1286 = shalt.err (!%p1283_p7)
}
 0x2f0   : > { %s1287_s6 = scalar_lea.hbm %s1693_s3, 256  ;;  %s1291_s14 = scalar_lea.hbm %s1746_s4, 512 }
 0x2f1   : > { %p1288_p12 = scmp.ne.s32.totalorder %s1693_s3, %s1287_s6  ;;  %p1292_p11 = scmp.lt.u32.totalorder %s1693_s3, %s1746_s4 }
 0x2f2   : > { %p1293_p13 = scmp.lt.u32.totalorder %s1291_s14, %s1287_s6  ;;  %p1295_p1 = scmp.lt.u32.totalorder %s1287_s6, %s1693_s3 }
 0x2f3   : > { %p1289_p2 = pnand %p1288_p12, %p1774_p6 }
 0x2f4   : > { %p1294_p0 = por %p1293_p13, %p1292_p11 }
 0x2f5   : > { %p1290_p8 = pneg %p1289_p2 }
 0x2f6   : > { %p1296_p10 = por %p1295_p1, %p1294_p0 }
 0x2f8   : > { %p1297_p3 = pnand %p1296_p10, %p1290_p8 }
 0x2fa   : > { %1300 = shalt.err (!%p1297_p3)
}
 0x2fb   : > { %s1381_s21 = smov 128   ;;  %s1382_s23 = smov 8  }
 0x2fc   : > { %1005 = dma.vmem_to_hbm [thread:$0]  (%p1774_p6), %s1688_s22, 256, %s1693_s3, %s748_s30, %s1381_s21, %s1381_s21, %s1382_s23  }
 0x2fd PF: > { %s778_s11 = sand.u32 1, %s1347_s15   ;;  %p1775_p4 = scmp.ne.s32.totalorder %s1758_s24, 0 }
 0x2fe   : > { %p1776_p9 = scmp.ge.s32.totalorder %s1367_s20, 2  ;;  %s779_s29 = scalar_lea.sflag [#allocation4], %s778_s11 }
 0x300   : > { %p1022_p5 = pnand %p1776_p9, %p1775_p4 }
 0x302   : > { %1342 = dma.done.wait (!%p1022_p5), %s779_s29, 256  }
 0x303   : > { %1344 = vsyncadd (!%p1022_p5), %s779_s29, 4294967040  ;;  %s24_s20 = sadd.s32 1, %s1367_s20   ;;  %s1777_s28 = sld [smem:[#allocation16_spill]] }
 0x304   : > { %p21_p7 = scmp.ge.s32.totalorder %s24_s20, 4   ;;  %s1778_s15 = smov %s1351_s16 }
 0x305   : > { %s1779_s16 = smov %s1355_s17  ;;  %s1780_s17 = smov %s1551_s7 }
 0x306   : > { %s1781_s18 = smov %s1363_s19  ;;  %23 = sbr.rel (!%p21_p7) target bundleno = 12 (0xc), region = 102 }
 0x309   : > { %s1782_s19 = smov %s1777_s28 }
 0x30d   :  { %784 = vsyncpa [#allocation3], 1 }
 0x30e   :  { %786 = vsyncpa [#allocation3 + $0x1], 1 }
 0x30f   :  { %787 = vsyncpa [#allocation6], 1 }
 0x310   :  { %789 = vsyncpa [#allocation6 + $0x1], 1 }
 0x311   :  { %790 = vsyncpa [#allocation9], 1 }
 0x312   :  { %791 = vsyncpa [#allocation4], 1 }
 0x313   :  { %793 = vsyncpa [#allocation4 + $0x1], 1 }

</bundles_post_ra>
